<compile_context>
chip_gen: v6e
topology: v6e:2x2x1
jax: 0.10.0
libtpu: 0.0.40
codegen_flags: <defaults>
</compile_context>

<pallas_src>
import jax
import jax.numpy as jnp
from jax.experimental import pallas as pl
from jax.experimental.pallas import tpu as pltpu

# ----------------------------- configuration -----------------------------
BATCH = 2
NUM_CONT = 4          # Xc dim
NUM_ENUM = 2          # number of enum variables (Xe dim)
ENUM_CARD = 4         # one-hot cardinality per enum variable
N_STAGES = 3          # sequence length (len(conf['stages']))
OUT_FEATURES = 32     # conf['out_features'] == RNN input/hidden size
NHIDDEN_EAC = 32      # conf['nhidden_eac']
NUM_OUT = 2
NOISE_LB = 1e-4

D_IN = NUM_CONT + NUM_ENUM * ENUM_CARD


# ----------------------------- Pallas kernel ------------------------------
def eacrnn_kernel(x_ref, w1_ref, b1_ref, w2_ref, b2_ref,
                  wih_ref, whh_ref, brnn_ref, whead_ref, bhead_ref, o_ref):
    """Fused EAC stages + Elman RNN (tanh) + mu/softplus-sigma2 heads."""
    x = x_ref[...]                                            # (B, D_IN)
    wih = wih_ref[...]                                        # (F, F)
    whh = whh_ref[...]                                        # (F, F)
    brnn = brnn_ref[...]                                      # (1, F) == bih+bhh

    # --- EAC stages (unrolled, weights VMEM-resident) with x@Wih hoisted
    #     off the serial recurrence chain.
    xw = []
    for s in range(N_STAGES):
        h1 = jnp.maximum(
            jnp.dot(x, w1_ref[s], preferred_element_type=jnp.float32)
            + b1_ref[s], 0.0)                                 # (B, H)
        inp_s = (jnp.dot(h1, w2_ref[s], preferred_element_type=jnp.float32)
                 + b2_ref[s])                                 # (B, F)
        xw.append(jnp.dot(inp_s, wih, preferred_element_type=jnp.float32))

    # --- RNN recurrence: 1 matmul per step on the critical path.
    # h0 == 0, so step 0 skips the (exactly zero) h @ Whh term.
    h = jnp.tanh(xw[0] + brnn)
    for t in range(1, N_STAGES):
        h = jnp.tanh(
            xw[t]
            + jnp.dot(h, whh, preferred_element_type=jnp.float32)
            + brnn)

    # --- Heads: single matmul against [Wmu | Wsig], single contiguous store.
    z = (jnp.dot(h, whead_ref[...], preferred_element_type=jnp.float32)
         + bhead_ref[...])                                    # (B, 2*NUM_OUT)
    # numerically-stable Softplus (matches torch.nn.Softplus threshold=20)
    sp = jnp.where(z > 20.0, z, jnp.log1p(jnp.exp(jnp.minimum(z, 20.0))))
    col = jax.lax.broadcasted_iota(jnp.int32, z.shape, 1)
    # mu in [:, :NUM_OUT], softplus(sigma2) + noise_lb in [:, NUM_OUT:]
    o_ref[...] = jnp.where(col < NUM_OUT, z, sp + NOISE_LB)


# ------------------------------ wrapper ------------------------------------
_VMEM = pl.BlockSpec(memory_space=pltpu.MemorySpace.VMEM)


@jax.jit
def eacrnn_forward(Xc, Xe, params):
    # glue: enum one-hot encoding + concat (enum_trans='onehot').
    # TODO(synk): could be folded into the kernel via iota-compare on Xe; kept
    # host-side (inside the same jit) for lowering robustness.
    onehot = jax.nn.one_hot(Xe, ENUM_CARD, dtype=jnp.float32)
    onehot = onehot.reshape(Xc.shape[0], NUM_ENUM * ENUM_CARD)
    x = jnp.concatenate([Xc, onehot], axis=1)                 # (B, D_IN)

    # pre-folded RNN bias and packed head weights (tiny, done under jit).
    brnn = params["bih"] + params["bhh"]                      # (1, F)
    whead = jnp.concatenate([params["wmu"], params["wsig"]], axis=1)
    bhead = jnp.concatenate([params["bmu"], params["bsig"]], axis=1)

    B = Xc.shape[0]
    return pl.pallas_call(
        eacrnn_kernel,
        out_shape=jax.ShapeDtypeStruct((B, 2 * NUM_OUT), jnp.float32),
        in_specs=[_VMEM] * 10,
        out_specs=_VMEM,
    )(x, params["w1"], params["b1"], params["w2"], params["b2"],
      params["wih"], params["whh"], brnn, whead, bhead)


# --------------------------- parameter creation ----------------------------
def xavier_uniform(key, fan_in, fan_out, gain):
    limit = gain * jnp.sqrt(6.0 / (fan_in + fan_out))
    # stored (in, out)
    return jax.random.uniform(key, (fan_in, fan_out), jnp.float32,
                              minval=-limit, maxval=limit)


def init_params(key):
    gain = jnp.sqrt(2.0)  # nn.init.calculate_gain('relu')
    keys = jax.random.split(key, 2 * N_STAGES + 4)
    # per-stage EAC MLPs (biases zero per init_weights)
    w1 = jnp.stack([xavier_uniform(keys[i], D_IN, NHIDDEN_EAC, gain)
                    for i in range(N_STAGES)])
    w2 = jnp.stack([xavier_uniform(keys[N_STAGES + i], NHIDDEN_EAC,
                                   OUT_FEATURES, gain)
                    for i in range(N_STAGES)])
    b1 = jnp.zeros((N_STAGES, 1, NHIDDEN_EAC), jnp.float32)
    b2 = jnp.zeros((N_STAGES, 1, OUT_FEATURES), jnp.float32)
    # RNN (num_layers=1, hidden==input==OUT_FEATURES), biases zero
    wih = xavier_uniform(keys[2 * N_STAGES + 0], OUT_FEATURES, OUT_FEATURES, gain)
    whh = xavier_uniform(keys[2 * N_STAGES + 1], OUT_FEATURES, OUT_FEATURES, gain)
    bih = jnp.zeros((1, OUT_FEATURES), jnp.float32)
    bhh = jnp.zeros((1, OUT_FEATURES), jnp.float32)
    # heads
    wmu = xavier_uniform(keys[2 * N_STAGES + 2], OUT_FEATURES, NUM_OUT, gain)
    wsig = xavier_uniform(keys[2 * N_STAGES + 3], OUT_FEATURES, NUM_OUT, gain)
    bmu = jnp.zeros((1, NUM_OUT), jnp.float32)
    bsig = jnp.zeros((1, NUM_OUT), jnp.float32)
    return dict(w1=w1, b1=b1, w2=w2, b2=b2, wih=wih, whh=whh, bih=bih, bhh=bhh,
                wmu=wmu, bmu=bmu, wsig=wsig, bsig=bsig)


# ------------------------------ reference ----------------------------------
def reference_forward(Xc, Xe, p):
    onehot = jax.nn.one_hot(Xe, ENUM_CARD, dtype=jnp.float32)
    onehot = onehot.reshape(Xc.shape[0], NUM_ENUM * ENUM_CARD)
    x = jnp.concatenate([Xc, onehot], axis=1)
    seq = []
    for s in range(N_STAGES):
        h = jnp.maximum(x @ p["w1"][s] + p["b1"][s], 0.0)
        seq.append(h @ p["w2"][s] + p["b2"][s])
    inp = jnp.stack(seq, axis=0)
    h = jnp.zeros((Xc.shape[0], OUT_FEATURES), jnp.float32)
    for t in range(N_STAGES):
        h = jnp.tanh(inp[t] @ p["wih"] + p["bih"] + h @ p["whh"] + p["bhh"])
    mu = h @ p["wmu"] + p["bmu"]
    z = h @ p["wsig"] + p["bsig"]
    sig = jnp.where(z > 20.0, z, jnp.log1p(jnp.exp(jnp.minimum(z, 20.0))))
    return jnp.concatenate([mu, sig + NOISE_LB], axis=1)


# --------------------------------- main -------------------------------------
if __name__ == "__main__":
    key = jax.random.PRNGKey(0)
    k_xc, k_xe, k_p = jax.random.split(key, 3)
    Xc = jax.random.normal(k_xc, (BATCH, NUM_CONT), jnp.float32)
    Xe = jax.random.randint(k_xe, (BATCH, NUM_ENUM), 0, ENUM_CARD, jnp.int32)
    params = init_params(k_p)

    out = eacrnn_forward(Xc, Xe, params)
    out = jax.block_until_ready(out)

    ref = reference_forward(Xc, Xe, params)
    assert out.shape == (BATCH, 2 * NUM_OUT), out.shape
    assert jnp.allclose(out, ref, atol=1e-5, rtol=1e-5), (out, ref)
    print("KERNEL_OK")
</pallas_src>

<mosaic_0001>
module attributes {stable_mosaic.version = 11 : i64} {
  func.func @eacrnn_kernel(%arg0: memref<2x12xf32, #tpu.memory_space<vmem>>, %arg1: memref<3x12x32xf32, #tpu.memory_space<vmem>>, %arg2: memref<3x1x32xf32, #tpu.memory_space<vmem>>, %arg3: memref<3x32x32xf32, #tpu.memory_space<vmem>>, %arg4: memref<3x1x32xf32, #tpu.memory_space<vmem>>, %arg5: memref<32x32xf32, #tpu.memory_space<vmem>>, %arg6: memref<32x32xf32, #tpu.memory_space<vmem>>, %arg7: memref<1x32xf32, #tpu.memory_space<vmem>>, %arg8: memref<32x4xf32, #tpu.memory_space<vmem>>, %arg9: memref<1x4xf32, #tpu.memory_space<vmem>>, %arg10: memref<2x4xf32, #tpu.memory_space<vmem>>) attributes {dimension_semantics = [], scalar_prefetch = 0 : i64, scratch_operands = 0 : i64, tpu.core_type = #tpu.core_type<tc>} {
    %c0 = arith.constant 0 : index
    %c0_0 = arith.constant 0 : index
    %0 = vector.load %arg0[%c0, %c0_0] : memref<2x12xf32, #tpu.memory_space<vmem>>, vector<2x12xf32>
    %c0_1 = arith.constant 0 : index
    %c0_2 = arith.constant 0 : index
    %1 = vector.load %arg5[%c0_1, %c0_2] : memref<32x32xf32, #tpu.memory_space<vmem>>, vector<32x32xf32>
    %c0_3 = arith.constant 0 : index
    %c0_4 = arith.constant 0 : index
    %2 = vector.load %arg6[%c0_3, %c0_4] : memref<32x32xf32, #tpu.memory_space<vmem>>, vector<32x32xf32>
    %c0_5 = arith.constant 0 : index
    %c0_6 = arith.constant 0 : index
    %3 = vector.load %arg7[%c0_5, %c0_6] : memref<1x32xf32, #tpu.memory_space<vmem>>, vector<1x32xf32>
    %c0_7 = arith.constant 0 : index
    %c0_8 = arith.constant 0 : index
    %c0_9 = arith.constant 0 : index
    %4 = vector.load %arg1[%c0_7, %c0_8, %c0_9] : memref<3x12x32xf32, #tpu.memory_space<vmem>>, vector<1x12x32xf32>
    %5 = vector.shape_cast %4 : vector<1x12x32xf32> to vector<12x32xf32>
    %cst = arith.constant dense<0.000000e+00> : vector<2x32xf32>
    %6 = tpu.matmul %0, %5, %cst {dimension_numbers = #tpu.dot_dimension_numbers<[1], [0], [0], [1], [0, 0, 1, 1], [], []>} : vector<2x12xf32>, vector<12x32xf32>, vector<2x32xf32> -> vector<2x32xf32>
    %c0_10 = arith.constant 0 : index
    %c0_11 = arith.constant 0 : index
    %c0_12 = arith.constant 0 : index
    %7 = vector.load %arg2[%c0_10, %c0_11, %c0_12] : memref<3x1x32xf32, #tpu.memory_space<vmem>>, vector<1x1x32xf32>
    %8 = vector.shape_cast %7 : vector<1x1x32xf32> to vector<1x32xf32>
    %9 = vector.broadcast %8 : vector<1x32xf32> to vector<2x32xf32>
    %10 = arith.addf %6, %9 : vector<2x32xf32>
    %cst_13 = arith.constant 0.000000e+00 : f32
    %11 = vector.broadcast %cst_13 : f32 to vector<2x32xf32>
    %12 = arith.maximumf %10, %11 : vector<2x32xf32>
    %c0_14 = arith.constant 0 : index
    %c0_15 = arith.constant 0 : index
    %c0_16 = arith.constant 0 : index
    %13 = vector.load %arg3[%c0_14, %c0_15, %c0_16] : memref<3x32x32xf32, #tpu.memory_space<vmem>>, vector<1x32x32xf32>
    %14 = vector.shape_cast %13 : vector<1x32x32xf32> to vector<32x32xf32>
    %cst_17 = arith.constant dense<0.000000e+00> : vector<2x32xf32>
    %15 = tpu.matmul %12, %14, %cst_17 {dimension_numbers = #tpu.dot_dimension_numbers<[1], [0], [0], [1], [0, 0, 1, 1], [], []>} : vector<2x32xf32>, vector<32x32xf32>, vector<2x32xf32> -> vector<2x32xf32>
    %c0_18 = arith.constant 0 : index
    %c0_19 = arith.constant 0 : index
    %c0_20 = arith.constant 0 : index
    %16 = vector.load %arg4[%c0_18, %c0_19, %c0_20] : memref<3x1x32xf32, #tpu.memory_space<vmem>>, vector<1x1x32xf32>
    %17 = vector.shape_cast %16 : vector<1x1x32xf32> to vector<1x32xf32>
    %18 = vector.broadcast %17 : vector<1x32xf32> to vector<2x32xf32>
    %19 = arith.addf %15, %18 : vector<2x32xf32>
    %cst_21 = arith.constant dense<0.000000e+00> : vector<2x32xf32>
    %20 = tpu.matmul %19, %1, %cst_21 {dimension_numbers = #tpu.dot_dimension_numbers<[1], [0], [0], [1], [0, 0, 1, 1], [], []>} : vector<2x32xf32>, vector<32x32xf32>, vector<2x32xf32> -> vector<2x32xf32>
    %c1 = arith.constant 1 : index
    %c0_22 = arith.constant 0 : index
    %c0_23 = arith.constant 0 : index
    %21 = vector.load %arg1[%c1, %c0_22, %c0_23] : memref<3x12x32xf32, #tpu.memory_space<vmem>>, vector<1x12x32xf32>
    %22 = vector.shape_cast %21 : vector<1x12x32xf32> to vector<12x32xf32>
    %cst_24 = arith.constant dense<0.000000e+00> : vector<2x32xf32>
    %23 = tpu.matmul %0, %22, %cst_24 {dimension_numbers = #tpu.dot_dimension_numbers<[1], [0], [0], [1], [0, 0, 1, 1], [], []>} : vector<2x12xf32>, vector<12x32xf32>, vector<2x32xf32> -> vector<2x32xf32>
    %c1_25 = arith.constant 1 : index
    %c0_26 = arith.constant 0 : index
    %c0_27 = arith.constant 0 : index
    %24 = vector.load %arg2[%c1_25, %c0_26, %c0_27] : memref<3x1x32xf32, #tpu.memory_space<vmem>>, vector<1x1x32xf32>
    %25 = vector.shape_cast %24 : vector<1x1x32xf32> to vector<1x32xf32>
    %26 = vector.broadcast %25 : vector<1x32xf32> to vector<2x32xf32>
    %27 = arith.addf %23, %26 : vector<2x32xf32>
    %cst_28 = arith.constant 0.000000e+00 : f32
    %28 = vector.broadcast %cst_28 : f32 to vector<2x32xf32>
    %29 = arith.maximumf %27, %28 : vector<2x32xf32>
    %c1_29 = arith.constant 1 : index
    %c0_30 = arith.constant 0 : index
    %c0_31 = arith.constant 0 : index
    %30 = vector.load %arg3[%c1_29, %c0_30, %c0_31] : memref<3x32x32xf32, #tpu.memory_space<vmem>>, vector<1x32x32xf32>
    %31 = vector.shape_cast %30 : vector<1x32x32xf32> to vector<32x32xf32>
    %cst_32 = arith.constant dense<0.000000e+00> : vector<2x32xf32>
    %32 = tpu.matmul %29, %31, %cst_32 {dimension_numbers = #tpu.dot_dimension_numbers<[1], [0], [0], [1], [0, 0, 1, 1], [], []>} : vector<2x32xf32>, vector<32x32xf32>, vector<2x32xf32> -> vector<2x32xf32>
    %c1_33 = arith.constant 1 : index
    %c0_34 = arith.constant 0 : index
    %c0_35 = arith.constant 0 : index
    %33 = vector.load %arg4[%c1_33, %c0_34, %c0_35] : memref<3x1x32xf32, #tpu.memory_space<vmem>>, vector<1x1x32xf32>
    %34 = vector.shape_cast %33 : vector<1x1x32xf32> to vector<1x32xf32>
    %35 = vector.broadcast %34 : vector<1x32xf32> to vector<2x32xf32>
    %36 = arith.addf %32, %35 : vector<2x32xf32>
    %cst_36 = arith.constant dense<0.000000e+00> : vector<2x32xf32>
    %37 = tpu.matmul %36, %1, %cst_36 {dimension_numbers = #tpu.dot_dimension_numbers<[1], [0], [0], [1], [0, 0, 1, 1], [], []>} : vector<2x32xf32>, vector<32x32xf32>, vector<2x32xf32> -> vector<2x32xf32>
    %c2 = arith.constant 2 : index
    %c0_37 = arith.constant 0 : index
    %c0_38 = arith.constant 0 : index
    %38 = vector.load %arg1[%c2, %c0_37, %c0_38] : memref<3x12x32xf32, #tpu.memory_space<vmem>>, vector<1x12x32xf32>
    %39 = vector.shape_cast %38 : vector<1x12x32xf32> to vector<12x32xf32>
    %cst_39 = arith.constant dense<0.000000e+00> : vector<2x32xf32>
    %40 = tpu.matmul %0, %39, %cst_39 {dimension_numbers = #tpu.dot_dimension_numbers<[1], [0], [0], [1], [0, 0, 1, 1], [], []>} : vector<2x12xf32>, vector<12x32xf32>, vector<2x32xf32> -> vector<2x32xf32>
    %c2_40 = arith.constant 2 : index
    %c0_41 = arith.constant 0 : index
    %c0_42 = arith.constant 0 : index
    %41 = vector.load %arg2[%c2_40, %c0_41, %c0_42] : memref<3x1x32xf32, #tpu.memory_space<vmem>>, vector<1x1x32xf32>
    %42 = vector.shape_cast %41 : vector<1x1x32xf32> to vector<1x32xf32>
    %43 = vector.broadcast %42 : vector<1x32xf32> to vector<2x32xf32>
    %44 = arith.addf %40, %43 : vector<2x32xf32>
    %cst_43 = arith.constant 0.000000e+00 : f32
    %45 = vector.broadcast %cst_43 : f32 to vector<2x32xf32>
    %46 = arith.maximumf %44, %45 : vector<2x32xf32>
    %c2_44 = arith.constant 2 : index
    %c0_45 = arith.constant 0 : index
    %c0_46 = arith.constant 0 : index
    %47 = vector.load %arg3[%c2_44, %c0_45, %c0_46] : memref<3x32x32xf32, #tpu.memory_space<vmem>>, vector<1x32x32xf32>
    %48 = vector.shape_cast %47 : vector<1x32x32xf32> to vector<32x32xf32>
    %cst_47 = arith.constant dense<0.000000e+00> : vector<2x32xf32>
    %49 = tpu.matmul %46, %48, %cst_47 {dimension_numbers = #tpu.dot_dimension_numbers<[1], [0], [0], [1], [0, 0, 1, 1], [], []>} : vector<2x32xf32>, vector<32x32xf32>, vector<2x32xf32> -> vector<2x32xf32>
    %c2_48 = arith.constant 2 : index
    %c0_49 = arith.constant 0 : index
    %c0_50 = arith.constant 0 : index
    %50 = vector.load %arg4[%c2_48, %c0_49, %c0_50] : memref<3x1x32xf32, #tpu.memory_space<vmem>>, vector<1x1x32xf32>
    %51 = vector.shape_cast %50 : vector<1x1x32xf32> to vector<1x32xf32>
    %52 = vector.broadcast %51 : vector<1x32xf32> to vector<2x32xf32>
    %53 = arith.addf %49, %52 : vector<2x32xf32>
    %cst_51 = arith.constant dense<0.000000e+00> : vector<2x32xf32>
    %54 = tpu.matmul %53, %1, %cst_51 {dimension_numbers = #tpu.dot_dimension_numbers<[1], [0], [0], [1], [0, 0, 1, 1], [], []>} : vector<2x32xf32>, vector<32x32xf32>, vector<2x32xf32> -> vector<2x32xf32>
    %55 = vector.broadcast %3 : vector<1x32xf32> to vector<2x32xf32>
    %56 = arith.addf %20, %55 : vector<2x32xf32>
    %57 = math.tanh %56 : vector<2x32xf32>
    %cst_52 = arith.constant dense<0.000000e+00> : vector<2x32xf32>
    %58 = tpu.matmul %57, %2, %cst_52 {dimension_numbers = #tpu.dot_dimension_numbers<[1], [0], [0], [1], [0, 0, 1, 1], [], []>} : vector<2x32xf32>, vector<32x32xf32>, vector<2x32xf32> -> vector<2x32xf32>
    %59 = arith.addf %37, %58 : vector<2x32xf32>
    %60 = vector.broadcast %3 : vector<1x32xf32> to vector<2x32xf32>
    %61 = arith.addf %59, %60 : vector<2x32xf32>
    %62 = math.tanh %61 : vector<2x32xf32>
    %cst_53 = arith.constant dense<0.000000e+00> : vector<2x32xf32>
    %63 = tpu.matmul %62, %2, %cst_53 {dimension_numbers = #tpu.dot_dimension_numbers<[1], [0], [0], [1], [0, 0, 1, 1], [], []>} : vector<2x32xf32>, vector<32x32xf32>, vector<2x32xf32> -> vector<2x32xf32>
    %64 = arith.addf %54, %63 : vector<2x32xf32>
    %65 = vector.broadcast %3 : vector<1x32xf32> to vector<2x32xf32>
    %66 = arith.addf %64, %65 : vector<2x32xf32>
    %67 = math.tanh %66 : vector<2x32xf32>
    %c0_54 = arith.constant 0 : index
    %c0_55 = arith.constant 0 : index
    %68 = vector.load %arg8[%c0_54, %c0_55] : memref<32x4xf32, #tpu.memory_space<vmem>>, vector<32x4xf32>
    %cst_56 = arith.constant dense<0.000000e+00> : vector<2x4xf32>
    %69 = tpu.matmul %67, %68, %cst_56 {dimension_numbers = #tpu.dot_dimension_numbers<[1], [0], [0], [1], [0, 0, 1, 1], [], []>} : vector<2x32xf32>, vector<32x4xf32>, vector<2x4xf32> -> vector<2x4xf32>
    %c0_57 = arith.constant 0 : index
    %c0_58 = arith.constant 0 : index
    %70 = vector.load %arg9[%c0_57, %c0_58] : memref<1x4xf32, #tpu.memory_space<vmem>>, vector<1x4xf32>
    %71 = vector.broadcast %70 : vector<1x4xf32> to vector<2x4xf32>
    %72 = arith.addf %69, %71 : vector<2x4xf32>
    %cst_59 = arith.constant 2.000000e+01 : f32
    %73 = vector.broadcast %cst_59 : f32 to vector<2x4xf32>
    %74 = arith.cmpf ogt, %72, %73 : vector<2x4xf32>
    %cst_60 = arith.constant 2.000000e+01 : f32
    %75 = vector.broadcast %cst_60 : f32 to vector<2x4xf32>
    %76 = arith.minimumf %72, %75 : vector<2x4xf32>
    %77 = math.exp %76 : vector<2x4xf32>
    %78 = math.log1p %77 : vector<2x4xf32>
    %79 = arith.select %74, %72, %78 : vector<2x4xi1>, vector<2x4xf32>
    %80 = tpu.iota {dimensions = array<i32: 1>} : vector<2x4xi32>
    %c2_i32 = arith.constant 2 : i32
    %81 = vector.broadcast %c2_i32 : i32 to vector<2x4xi32>
    %82 = arith.cmpi slt, %80, %81 : vector<2x4xi32>
    %cst_61 = arith.constant 9.99999974E-5 : f32
    %83 = vector.broadcast %cst_61 : f32 to vector<2x4xf32>
    %84 = arith.addf %79, %83 : vector<2x4xf32>
    %85 = arith.select %82, %72, %84 : vector<2x4xi1>, vector<2x4xf32>
    %c0_62 = arith.constant 0 : index
    %c0_63 = arith.constant 0 : index
    %86 = vector.load %arg10[%c0_62, %c0_63] : memref<2x4xf32, #tpu.memory_space<vmem>>, vector<2x4xf32>
    tpu.vector_store %arg10[%c0_62, %c0_63], %85 {strides = array<i32>} : memref<2x4xf32, #tpu.memory_space<vmem>>, vector<2x4xf32>,
    return
  }
}

</mosaic_0001>

<bundles_post_ra>
// kernel: eacrnn_forward.1
= control target key start
LH: loop header
LB: loop body
LE: loop exit
PB: predicated region body
PF: predicated region fallthrough
CT: control target
= control target key end

     0   :  { %15 = vsyncpa [#allocation3], 0  ;;  %s1631_s0 = inlined_call_operand.vmem [shape: f32[2,12], index: 0, kind: input, shape index: {}]   ;;  %s1632_s1 = inlined_call_operand.vmem [shape: f32[3,12,32], index: 1, kind: input, shape index: {}]   ;;  %s1633_s2 = inlined_call_operand.vmem [shape: f32[3,1,32], index: 2, kind: input, shape index: {}]   ;;  %s1634_s3 = inlined_call_operand.hbm [shape: f32[3,32,32], index: 3, kind: input, shape index: {}]   ;;  %s1635_s4 = inlined_call_operand.hbm [shape: f32[3,1,32], index: 4, kind: input, shape index: {}]   ;;  %s1636_s5 = inlined_call_operand.vmem [shape: f32[32,32], index: 5, kind: input, shape index: {}]   ;;  %s1637_s6 = inlined_call_operand.hbm [shape: f32[32,32], index: 6, kind: input, shape index: {}]   ;;  %s1638_s7 = inlined_call_operand.vmem [shape: f32[1,32], index: 7, kind: input, shape index: {}]   ;;  %s1639_s8 = inlined_call_operand.vmem [shape: f32[32,4], index: 8, kind: input, shape index: {}]   ;;  %s1640_s9 = inlined_call_operand.vmem [shape: f32[1,4], index: 9, kind: input, shape index: {}]   ;;  %s1641_s10 = inlined_call_operand.hbm [shape: f32[2,4], index: 10, kind: output, shape index: {}]  }
   0x1   :  { %16 = vsyncpa [#allocation6], 0 }
   0x2   :  { %17 = vsyncpa [#allocation4], 0  ;;  %s1408_s13 = smov [#allocation5]  }
   0x3   :  { %s41_s14 = sshll.u32 %s1408_s13, 4  ;;  %s42_s14 = int_to_ptr.vmem [resolvable:$true] %s41_s14 }
   0x4   :  { %s1330_s15 = scalar_lea.vmem %s42_s14, 48  ;;  %s1334_s16 = scalar_lea.vmem %s42_s14, 64 }
   0x5   :  { %p1331_p0 = scmp.ne.s32.totalorder %s42_s14, %s1330_s15  ;;  %p1335_p1 = scmp.lt.s32.totalorder %s42_s14, %s42_s14 }
   0x6   :  { %p1336_p2 = scmp.lt.s32.totalorder %s1334_s16, %s1330_s15 }
   0x8   :  { %p1337_p3 = por %p1336_p2, %p1335_p1 }
   0xa   :  { %p1338_p4 = pnand %p1337_p3, %p1331_p0 }
   0xc   :  { %1341 = shalt.err (!%p1338_p4)
}
   0xd   :  { %s1409_s17 = smov 16   ;;  %s1410_s18 = smov 1  }
   0xe   :  { %47 = dma.hbm_to_vmem [thread:$0]  %s1635_s4, 48, %s42_s14, [#allocation6], %s1409_s17, %s1409_s17, %s1410_s18  }
   0xf   :  { %s1411_s21 = smov [#allocation2]  }
  0x10   :  { %s29_s22 = sshll.u32 %s1411_s21, 4  ;;  %s30_s22 = int_to_ptr.vmem [resolvable:$true] %s29_s22 }
  0x11   :  { %s1350_s23 = scalar_lea.vmem %s30_s22, 1536  ;;  %p1355_p6 = scmp.lt.s32.totalorder %s30_s22, %s30_s22 }
  0x12   :  { %p1351_p5 = scmp.ne.s32.totalorder %s30_s22, %s1350_s23  ;;  %p1356_p7 = scmp.lt.s32.totalorder %s1350_s23, %s1350_s23 }
  0x14   :  { %p1357_p8 = por %p1356_p7, %p1355_p6 }
  0x16   :  { %p1358_p9 = pnand %p1357_p8, %p1351_p5 }
  0x18   :  { %1361 = shalt.err (!%p1358_p9)
}
  0x19   :  { %s1412_s24 = smov 128   ;;  %s1413_s25 = smov 8  }
  0x1a   :  { %35 = dma.hbm_to_vmem [thread:$0]  %s1634_s3, 1536, %s30_s22, [#allocation3], %s1412_s24, %s1412_s24, %s1413_s25  }
  0x1b   :  { %s1414_s28 = smov [#allocation7]  }
  0x1c   :  { %s55_s29 = sshll.u32 %s1414_s28, 4  ;;  %s56_s29 = int_to_ptr.vmem [resolvable:$true] %s55_s29 }
  0x1d   :  { %s1370_s4 = scalar_lea.vmem %s56_s29, 512  ;;  %p1375_p11 = scmp.lt.s32.totalorder %s56_s29, %s56_s29 }
  0x1e   :  { %p1371_p10 = scmp.ne.s32.totalorder %s56_s29, %s1370_s4  ;;  %p1376_p12 = scmp.lt.s32.totalorder %s1370_s4, %s1370_s4 }
  0x20   :  { %p1377_p13 = por %p1376_p12, %p1375_p11 }
  0x22   :  { %p1378_p0 = pnand %p1377_p13, %p1371_p10 }
  0x24   :  { %1381 = shalt.err (!%p1378_p0)
}
  0x25   :  { %61 = dma.hbm_to_vmem [thread:$0]  %s1637_s6, 512, %s56_s29, [#allocation6], %s1412_s24, %s1412_s24, %s1413_s25  }
  0x26   :  { %1402 = dma.done.wait [#allocation3], 1536  }
  0x27   :  { %1403 = vsyncadd [#allocation3], 4294965760 }
  0x28   :  { %1404 = dma.done.wait [#allocation6], 560  }
  0x29   :  { %1405 = vsyncadd [#allocation6], 4294966736  ;;  %v1415_v0 = vmov 0.0   ;;  %vm1416_vm0 = vmmov 0   ;;  %vm100_vm1 = vcmask 1043456   ;;  %v87_v2 = vld [vmem:[%s1632_s1] sm:$0xff] }
  0x2a   :  { %1182 = vmatprep.subr.mxu0 %v1415_v0  ;;  %1186 = vmatprep.mubr.msk.f32.mxu0 %vm1416_vm0, %v1415_v0  ;;  %v88_v1 = vld [vmem:[%s1632_s1 + $0x8] sm:$0xf]  ;;  %v1498_v3 = vld [vmem:[%s1631_s0] sm:$0x3]  ;;  %vm96_vm2 = vcmask 97280   ;;  %v178_v4 = vld [vmem:[#allocation2 + $0x18] sm:$0xff] }
  0x2b   :  { %1189 = vmatprep.subr.mxu1 %v1415_v0  ;;  %1197 = vmatprep.mubr.msk.f32.mxu1 %vm1416_vm0, %v1415_v0  ;;  %v1105_v5 = vld [vmem:[%s1632_s1 + $0x18] sm:$0xf]  ;;  %v1104_v6 = vld [vmem:[%s1632_s1 + $0x10] sm:$0xff]  ;;  %v176_v8 = vld [vmem:[#allocation2 + $0x8] sm:$0xff]  ;;  %vm186_vm3 = vcmask 261120   ;;  %vm1081_vm7 = vcmask 25600  }
  0x2c   :  { %1183 = vmatpush3.msk.msra.mxu0 %vm100_vm1, %v88_v1  ;;  %1190 = vmatpush3.msra.mxu1 %v178_v4  ;;  %v177_v7 = vld [vmem:[#allocation2 + $0x10] sm:$0xff]  ;;  %v175_v9 = vld [vmem:[#allocation2] sm:$0xff]  ;;  %v349_v10 = vld [vmem:[#allocation2 + $0x38] sm:$0xff] }
  0x2d   :  { %1184 = vmatprep.subr.mxu0 %v1415_v0  ;;  %1191 = vmatprep.subr.mxu1 %v1415_v0  ;;  %v348_v11 = vld [vmem:[#allocation2 + $0x30] sm:$0xff]  ;;  %v347_v12 = vld [vmem:[#allocation2 + $0x28] sm:$0xff]  ;;  %v346_v13 = vld [vmem:[#allocation2 + $0x20] sm:$0xff] }
  0x2e   :  { %1185 = vmatpush3.msra.mxu0 %v87_v2  ;;  %1192 = vmatpush3.msra.mxu1 %v177_v7  ;;  %v1099_v14 = vld [vmem:[%s1633_s2] ss:$0 sm:$0xff]  ;;  %v1107_v18 = vld [vmem:[%s1633_s2 + $0x1] ss:$0 sm:$0xff]  ;;  %v81_v24 = vld [vmem:[%s1636_s5 + $0x18] sm:$0xff] }
  0x2f   :  { %1187 = vmatmul.mubr.msk.f32.vlgmr.msra.gmra.mxu0 %vm96_vm2, %v1498_v3  ;;  %1200 = vmatprep.subr.mxu0 %v1415_v0  ;;  %v80_v25 = vld [vmem:[%s1636_s5 + $0x10] sm:$0xff]  ;;  %v79_v26 = vld [vmem:[%s1636_s5 + $0x8] sm:$0xff]  ;;  %v78_v27 = vld [vmem:[%s1636_s5] sm:$0xff] }
  0x30   :  { %1201 = vmatpush3.msk.msra.mxu0 %vm100_vm1, %v1105_v5  ;;  %1204 = vmatprep.mubr.msk.f32.mxu0 %vm1416_vm0, %v1415_v0  ;;  %v1113_v28 = vld [vmem:[%s1632_s1 + $0x28] sm:$0xf]  ;;  %v1112_v29 = vld [vmem:[%s1632_s1 + $0x20] sm:$0xff]  ;;  %v520_v38 = vld [vmem:[#allocation2 + $0x58] sm:$0xff] }
  0x31   :  { %1202 = vmatprep.subr.mxu0 %v1415_v0  ;;  %1193 = vmatprep.subr.mxu1 %v1415_v0  ;;  %v1102_v30 = vld [vmem:[#allocation5] ss:$0 sm:$0xff]  ;;  %v1110_v34 = vld [vmem:[#allocation5 + $0x1] ss:$0 sm:$0xff]  ;;  %v519_v39 = vld [vmem:[#allocation2 + $0x50] sm:$0xff] }
  0x32   :  { %1203 = vmatpush3.msra.mxu0 %v1104_v6  ;;  %1194 = vmatpush3.msra.mxu1 %v176_v8  ;;  %v1115_v40 = vld [vmem:[%s1633_s2 + $0x2] ss:$0 sm:$0xff]  ;;  %v518_v42 = vld [vmem:[#allocation2 + $0x48] sm:$0xff]  ;;  %v84_v48 = vld [vmem:[#allocation7 + $0x10] sm:$0xff] }
  0x33   :  { %1205 = vmatmul.mubr.msk.f32.vlgmr.msra.gmra.mxu0 %vm96_vm2, %v1498_v3  ;;  %1207 = vmatprep.subr.mxu0 %v1415_v0  ;;  %v517_v44 = vld [vmem:[#allocation2 + $0x40] sm:$0xff]  ;;  %v83_v49 = vld [vmem:[#allocation7 + $0x8] sm:$0xff]  ;;  %v981_v6 = vld [vmem:[%s1639_s8 + $0x18] sm:$0xff] }
  0x34   :  { %1215 = vmatprep.mubr.msk.f32.mxu0 %vm1416_vm0, %v1415_v0  ;;  %1195 = vmatprep.subr.mxu1 %v1415_v0  ;;  %v85_v47 = vld [vmem:[#allocation7 + $0x18] sm:$0xff]  ;;  %v82_v50 = vld [vmem:[#allocation7] sm:$0xff]  ;;  %v980_v7 = vld [vmem:[%s1639_s8 + $0x10] sm:$0xff] }
  0x35   :  { %1196 = vmatpush3.msra.mxu1 %v175_v9  ;;  %1208 = vmatpush3.msra.mxu0 %v349_v10  ;;  %v1120_v51 = vld [vmem:[%s1638_s7] ss:$0 sm:$0xff]  ;;  %v1118_v58 = vld [vmem:[#allocation5 + $0x2] ss:$0 sm:$0xff]  ;;  %v979_v8 = vld [vmem:[%s1639_s8 + $0x8] sm:$0xff] }
  0x36   :  { %1218 = vmatprep.subr.mxu1 %v1415_v0  ;;  %1209 = vmatprep.subr.mxu0 %v1415_v0  ;;  %v978_v9 = vld [vmem:[%s1639_s8] sm:$0xff]  ;;  %s1417_s8 = smov [#allocation8]  }
  0x37   :  { %1210 = vmatpush3.msra.mxu0 %v348_v11 }
  0x38   :  { %1211 = vmatprep.subr.mxu0 %v1415_v0 }
  0x39   :  { %1212 = vmatpush3.msra.mxu0 %v347_v12 }
  0x3a   :  { %1213 = vmatprep.subr.mxu0 %v1415_v0 }
  0x3b   :  { %1214 = vmatpush3.msra.mxu0 %v346_v13 }
  0x3c   :  { %1236 = vmatprep.subr.mxu0 %v1415_v0 }
  0xef   :  { %v170_v15 = vpop.f32.mrf.mxu0 }
  0xf0   :  { %v171_v16 = vadd.f32 %v1099_v14, %v170_v15  ;;  %v1126_v15 = vld [vmem:[%s1640_s9] ss:$0 sm:$0xff]  ;;  %s1089_s9 = sshll.u32 %s1417_s8, 4  ;;  %s1090_s9 = int_to_ptr.vmem [resolvable:$true] %s1089_s9 }
  0xf1   :  { %v1188_v17 = vpop.f32.mrf.mxu0  ;;  %s1382_s21 = scalar_lea.vmem %s1090_s9, 32  ;;  %p1387_p2 = scmp.lt.s32.totalorder %s1090_s9, %s1090_s9 }
  0xf2   :  { %v174_v19 = vmax.f32 %v171_v16, 0.0  ;;  %p1383_p1 = scmp.ne.s32.totalorder %s1090_s9, %s1382_s21  ;;  %p1388_p3 = scmp.lt.s32.totalorder %s1382_s21, %s1382_s21 }
  0xf3   :  { %v340_v20 = vpop.f32.mrf.mxu0 }
  0xf4   :  { %1198 = vmatmul.mubr.msk.f32.vlgmr.msra.gmra.mxu1 %vm186_vm3, %v174_v19  ;;  %v341_v21 = vadd.f32 %v1107_v18, %v340_v20  ;;  %p1389_p4 = por %p1388_p3, %p1387_p2 }
  0xf5   :  { %v1206_v22 = vpop.f32.mrf.mxu0  ;;  %1222 = vmatprep.mubr.msk.f32.mxu1 %vm1416_vm0, %v1415_v0  ;;  %1219 = vmatpush3.msk.msra.mxu1 %vm100_vm1, %v1113_v28 }
  0xf6   :  { %v344_v23 = vmax.f32 %v341_v21, 0.0  ;;  %1220 = vmatprep.subr.mxu1 %v1415_v0  ;;  %p1390_p5 = pnand %p1389_p4, %p1383_p1 }
  0xf7   :  { %1221 = vmatpush3.msra.mxu1 %v1112_v29 }
  0xf8   :  { %1216 = vmatmul.mubr.msk.f32.vlgmr.msra.gmra.mxu0 %vm186_vm3, %v344_v23  ;;  %1223 = vmatmul.mubr.msk.f32.vlgmr.msra.gmra.mxu1 %vm96_vm2, %v1498_v3  ;;  %v1076_v23 = vlaneseq }
  0xf9   :  { %1237 = vmatpush3.msra.mxu0 %v81_v24  ;;  %1244 = vmatprep.mubr.msk.f32.mxu0 %vm1416_vm0, %v1415_v0 }
  0xfa   :  { %1238 = vmatprep.subr.mxu0 %v1415_v0  ;;  %1225 = vmatprep.subr.mxu1 %v1415_v0 }
  0xfb   :  { %1239 = vmatpush3.msra.mxu0 %v80_v25  ;;  %1233 = vmatprep.mubr.msk.f32.mxu1 %vm1416_vm0, %v1415_v0 }
  0xfc   :  { %1240 = vmatprep.subr.mxu0 %v1415_v0  ;;  %1226 = vmatpush3.msra.mxu1 %v520_v38 }
  0xfd   :  { %1241 = vmatpush3.msra.mxu0 %v79_v26  ;;  %1227 = vmatprep.subr.mxu1 %v1415_v0 }
  0xfe   :  { %1242 = vmatprep.subr.mxu0 %v1415_v0  ;;  %1228 = vmatpush3.msra.mxu1 %v519_v39 }
  0xff   :  { %1243 = vmatpush3.msra.mxu0 %v78_v27  ;;  %1229 = vmatprep.subr.mxu1 %v1415_v0 }
 0x100   :  { %1258 = vmatprep.subr.mxu0 %v1415_v0  ;;  %1230 = vmatpush3.msra.mxu1 %v518_v42 }
 0x101   :  { %1231 = vmatprep.subr.mxu1 %v1415_v0 }
 0x102   :  { %1232 = vmatpush3.msra.mxu1 %v517_v44 }
 0x103   :  { %1247 = vmatprep.subr.mxu1 %v1415_v0 }
 0x1b4   :  { %v256_v31 = vpop.f32.mrf.mxu1 }
 0x1b5   :  { %v257_v32 = vadd.f32 %v1102_v30, %v256_v31 }
 0x1b6   :  { %v1199_v33 = vpop.f32.mrf.mxu1 }
 0x1b7   :  { %1245 = vmatmul.mubr.msk.f32.vlgmr.msra.gmra.mxu0 %vm186_vm3, %v257_v32 }
 0x1b8   :  { %1259 = vmatpush3.msra.mxu0 %v81_v24  ;;  %v427_v35 = vpop.f32.mrf.mxu0  ;;  %1266 = vmatprep.mubr.msk.f32.mxu0 %vm1416_vm0, %v1415_v0  ;;  %v511_v41 = vpop.f32.mrf.mxu1 }
 0x1b9   :  { %1260 = vmatprep.subr.mxu0 %v1415_v0  ;;  %v428_v37 = vadd.f32 %v1110_v34, %v427_v35  ;;  %v512_v43 = vadd.f32 %v1115_v40, %v511_v41 }
 0x1ba   :  { %1261 = vmatpush3.msra.mxu0 %v80_v25  ;;  %v1217_v36 = vpop.f32.mrf.mxu0  ;;  %v1224_v45 = vpop.f32.mrf.mxu1 }
 0x1bb   :  { %1262 = vmatprep.subr.mxu0 %v1415_v0  ;;  %v515_v46 = vmax.f32 %v512_v43, 0.0 }
 0x1bc   :  { %1263 = vmatpush3.msra.mxu0 %v79_v26 }
 0x1bd   :  { %1264 = vmatprep.subr.mxu0 %v1415_v0  ;;  %1234 = vmatmul.mubr.msk.f32.vlgmr.msra.gmra.mxu1 %vm186_vm3, %v515_v46 }
 0x1be   :  { %1265 = vmatpush3.msra.mxu0 %v78_v27  ;;  %1248 = vmatpush3.msra.mxu1 %v85_v47 }
 0x1bf   :  { %1267 = vmatmul.mubr.msk.f32.vlgmr.msra.gmra.mxu0 %vm186_vm3, %v428_v37  ;;  %1280 = vmatprep.subr.mxu0 %v1415_v0 }
 0x1c0   :  { %1281 = vmatpush3.msra.mxu0 %v81_v24  ;;  %1288 = vmatprep.mubr.msk.f32.mxu0 %vm1416_vm0, %v1415_v0 }
 0x1c1   :  { %1282 = vmatprep.subr.mxu0 %v1415_v0  ;;  %1255 = vmatprep.mubr.msk.f32.mxu1 %vm1416_vm0, %v1415_v0 }
 0x1c2   :  { %1283 = vmatpush3.msra.mxu0 %v80_v25  ;;  %1249 = vmatprep.subr.mxu1 %v1415_v0 }
 0x1c3   :  { %1284 = vmatprep.subr.mxu0 %v1415_v0  ;;  %1250 = vmatpush3.msra.mxu1 %v84_v48 }
 0x1c4   :  { %1285 = vmatpush3.msra.mxu0 %v79_v26  ;;  %1251 = vmatprep.subr.mxu1 %v1415_v0 }
 0x1c5   :  { %1286 = vmatprep.subr.mxu0 %v1415_v0  ;;  %1252 = vmatpush3.msra.mxu1 %v83_v49 }
 0x1c6   :  { %1287 = vmatpush3.msra.mxu0 %v78_v27  ;;  %1253 = vmatprep.subr.mxu1 %v1415_v0  ;;  %v1077_v27 = vand.u32 127, %v1076_v23 }
 0x1c7   :  { %1254 = vmatpush3.msra.mxu1 %v82_v50 }
 0x1c8   :  { %1269 = vmatprep.subr.mxu1 %v1415_v0  ;;  %vm1078_vm6 = vcmp.lt.s32.totalorder %v1077_v27, 2 }
 0x277   :  { %v677_v52 = vpop.f32.mrf.mxu0 }
 0x278   :  { %v678_v53 = vadd.f32 %v1120_v51, %v677_v52 }
 0x279   :  { %v1246_v54 = vpop.f32.mrf.mxu0 }
 0x27a   :  { %1312 = vtanh.f32 %v678_v53 }
 0x27d   :  { %v598_v59 = vpop.f32.mrf.mxu1 }
 0x27e   :  { %v599_v60 = vadd.f32 %v1118_v58, %v598_v59 }
 0x27f   :  { %v824_v55 = vpop.f32.mrf.mxu0  ;;  %v1235_v61 = vpop.f32.mrf.mxu1 }
 0x280   :  { %1289 = vmatmul.mubr.msk.f32.vlgmr.msra.gmra.mxu0 %vm186_vm3, %v599_v60 }
 0x281   :  { %v1268_v56 = vpop.f32.mrf.mxu0 }
 0x287   :  { %v1313_v57 = vpop.eup %1312 }
 0x288   :  { %1256 = vmatmul.mubr.msk.f32.vlgmr.msra.gmra.mxu1 %vm186_vm3, %v1313_v57 }
 0x289   :  { %1270 = vmatpush3.msra.mxu1 %v85_v47  ;;  %1277 = vmatprep.mubr.msk.f32.mxu1 %vm1416_vm0, %v1415_v0 }
 0x28a   :  { %1271 = vmatprep.subr.mxu1 %v1415_v0 }
 0x28b   :  { %1272 = vmatpush3.msra.mxu1 %v84_v48 }
 0x28c   :  { %1273 = vmatprep.subr.mxu1 %v1415_v0 }
 0x28d   :  { %1274 = vmatpush3.msra.mxu1 %v83_v49 }
 0x28e   :  { %1275 = vmatprep.subr.mxu1 %v1415_v0 }
 0x28f   :  { %1276 = vmatpush3.msra.mxu1 %v82_v50 }
 0x290   :  { %1291 = vmatprep.subr.mxu1 %v1415_v0 }
 0x340   :  { %v972_v4 = vpop.f32.mrf.mxu0 }
 0x342   :  { %v1290_v5 = vpop.f32.mrf.mxu0 }
 0x348   :  { %v751_v62 = vpop.f32.mrf.mxu1 }
 0x349   :  { %v825_v63 = vadd.f32 %v824_v55, %v751_v62 }
 0x34a   :  { %v1257_v1 = vpop.f32.mrf.mxu1 }
 0x34b   :  { %v828_v2 = vadd.f32 %v1120_v51, %v825_v63 }
 0x34d   :  { %1314 = vtanh.f32 %v828_v2 }
 0x35a   :  { %v1315_v3 = vpop.eup %1314 }
 0x35b   :  { %1278 = vmatmul.mubr.msk.f32.vlgmr.msra.gmra.mxu1 %vm186_vm3, %v1315_v3 }
 0x35c   :  { %1299 = vmatprep.mubr.msk.f32.mxu1 %vm1416_vm0, %v1415_v0  ;;  %1292 = vmatpush3.msra.mxu1 %v981_v6 }
 0x35d   :  { %1293 = vmatprep.subr.mxu1 %v1415_v0 }
 0x35e   :  { %1294 = vmatpush3.msra.mxu1 %v980_v7 }
 0x35f   :  { %1295 = vmatprep.subr.mxu1 %v1415_v0 }
 0x360   :  { %1296 = vmatpush3.msra.mxu1 %v979_v8 }
 0x361   :  { %1297 = vmatprep.subr.mxu1 %v1415_v0 }
 0x362   :  { %1298 = vmatpush3.msra.mxu1 %v978_v9 }
 0x41b   :  { %v899_v10 = vpop.f32.mrf.mxu1 }
 0x41c   :  { %v973_v11 = vadd.f32 %v972_v4, %v899_v10 }
 0x41d   :  { %v1279_v12 = vpop.f32.mrf.mxu1 }
 0x41e   :  { %v976_v13 = vadd.f32 %v1120_v51, %v973_v11 }
 0x420   :  { %1316 = vtanh.f32 %v976_v13 }
 0x42d   :  { %v1317_v14 = vpop.eup %1316 }
 0x42e   :  { %1300 = vmatmul.mubr.msk.f32.vlgmr.msra.gmra.mxu1 %vm186_vm3, %v1317_v14 }
 0x4ee   :  { %v1058_v16 = vpop.f32.mrf.mxu1 }
 0x4ef   :  { %v1059_v17 = vadd.f32 %v1126_v15, %v1058_v16 }
 0x4f0   :  { %v1301_v18 = vpop.f32.mrf.mxu1 }
 0x4f1   :  { %v1063_v19 = vmin.f32 %v1059_v17, 20.0  ;;  %vm1062_vm5 = vcmp.gt.f32.partialorder %v1059_v17, 20.0 }
 0x4f3   :  { %v1064_v20 = vmul.f32 1.442695, %v1063_v19 }
 0x4f5   :  { %1318 = vpow2.f32 %v1064_v20 }
 0x502   :  { %v1319_v0 = vpop.eup %1318 }
 0x503   :  { %v1066_v21 = vadd.f32 1.0, %v1319_v0  ;;  %v1069_v22 = vmul.f32 -0.5, %v1319_v0  ;;  %v1072_v25 = vand.u32 2147483647, %v1319_v0 }
 0x505   :  { %1320 = vlog2.f32 %v1066_v21  ;;  %v1070_v24 = vadd.f32 1.0, %v1069_v22  ;;  %vm1073_vm4 = vcmp.lt.f32.partialorder %v1072_v25, 0.0004427343 }
 0x507   :  { %v1071_v29 = vmul.f32 %v1319_v0, %v1070_v24 }
 0x512   :  { %v1321_v26 = vpop.eup %1320 }
 0x513   :  { %v1068_v28 = vmul.f32 0.6931472, %v1321_v26 }
 0x515   :  { %v1074_v30 = vsel %vm1073_vm4, %v1071_v29, %v1068_v28 }
 0x516   :  { %v1075_v31 = vsel %vm1062_vm5, %v1059_v17, %v1074_v30 }
 0x517   :  { %v1079_v32 = vadd.f32 0.0001, %v1075_v31 }
 0x519   :  { %v1080_v33 = vsel %vm1078_vm6, %v1059_v17, %v1079_v32 }
 0x51a   :  { %1082 = vst.msk [vmem:[#allocation8] sm:$0x3] %vm1081_vm7, %v1080_v33 }
 0x51b   :  { %1393 = shalt.err (!%p1390_p5)
}
 0x51c   :  { %1092 = dma.vmem_to_hbm [thread:$0]  %s1090_s9, 32, %s1641_s10, [#allocation4]  }
 0x51d   :  { %1406 = dma.done.wait [#allocation4], 32  }
 0x51e   :  { %1407 = vsyncadd [#allocation4], 4294967264 }
 0x51f   :  { %1096 = vsyncpa [#allocation3], 1 }
 0x520   :  { %1097 = vsyncpa [#allocation6], 1 }
 0x521   :  { %1098 = vsyncpa [#allocation4], 1 }

</bundles_post_ra>
